<compile_context>
chip_gen: v5e
topology: v5e:2x2
jax: 0.10.0
libtpu: 0.0.40
codegen_flags: <defaults>
</compile_context>

<pallas_src>
import jax
import jax.numpy as jnp
from jax import lax
from jax.experimental import pallas as pl
from jax.experimental.pallas import tpu as pltpu

LANE = 128


def _vmem_budget():
    """Per-generation (row-tile byte cap, scoped-VMEM limit).

    The fused kernel pipelines 4 streams (buf in, x in, new-buf out, seq out), each
    double-buffered -> peak VMEM ~= 8 * tile_bytes.  v5e/v6e have 128 MiB VMEM, so a
    4 MiB tile (32 MiB pipelined) is comfortable; v7x has only 64 MiB per TensorCore,
    so stay at 2 MiB tiles and a <=40 MiB scoped limit there.
    """
    try:
        cap = pltpu.get_tpu_info().vmem_capacity_bytes
    except Exception:  # interpret mode / query unavailable
        cap = None
    if cap is not None and cap >= 96 * 1024 * 1024:      # v5e / v6e (128 MiB VMEM)
        return 4 * 1024 * 1024, 64 * 1024 * 1024
    return 2 * 1024 * 1024, 40 * 1024 * 1024             # v7x / unknown: conservative


def _pick_row_tile(rows, itemsize, sublane, cap_bytes):
    """Largest sublane-aligned row tile under cap_bytes.  No divisor requirement:
    the grid uses cdiv and Pallas masks the partial last block."""
    cap_rows = max(sublane, (cap_bytes // (LANE * itemsize)) // sublane * sublane)
    return int(min(rows, cap_rows))


# -----------------------------------------------------------------------------------
# Fused kernel: ring-buffer append + oldest->newest unroll in ONE pallas_call.
#
#   grid = (n_row_tiles, S)   (row tiles outer, s inner, so the slot-row output block
#                              stays resident across the whole inner s sweep and is
#                              written back to HBM exactly once -> O(F) append traffic)
#
#   inputs : slot (scalar prefetch), buf (aliased ring buffer), x (new observation)
#   outputs: new_buf (aliased with buf; only ring slot `slot` is touched),
#            seq     (deque contents, oldest -> newest)
# -----------------------------------------------------------------------------------
def _append_unroll_kernel(slot_ref, buf_ref, x_ref, newbuf_ref, seq_ref):
    del slot_ref  # consumed by the index_maps only
    s = pl.program_id(1)
    is_newest = s == pl.num_programs(1) - 1

    @pl.when(s == 0)
    def _():
        # New row into the resident slot-row block; DMA'd back to HBM once per tile.
        newbuf_ref[...] = x_ref[...]

    @pl.when(is_newest)
    def _():
        # Newest deque entry comes straight from the x tile (VMEM -> VMEM forward).
        seq_ref[...] = x_ref[...]

    @pl.when(jnp.logical_not(is_newest))
    def _():
        seq_ref[...] = buf_ref[...]


def fused_append_unroll(buf, x_row, slot, *, row_tile, vmem_limit_bytes):
    """buf: (S, R, 128) ring buffer (aliased in/out), x_row: (1, R, 128),
    slot: (1,) int32 ring slot receiving the new row."""
    S, R, _ = buf.shape
    n_tiles = pl.cdiv(R, row_tile)

    def buf_map(j, s, slot):
        # Oldest -> newest gather.  s == S-1 (the newest entry) is served from the x
        # tile inside the kernel, so remap it onto the s == S-2 block: consecutive
        # identical indices let Pallas skip that DMA entirely, and the freshly written
        # slot row is never read back from HBM (no read / write-back race).
        return (lax.rem(slot[0] + 1 + jnp.minimum(s, S - 2), S), j, 0)

    def x_map(j, s, slot):
        return (0, j, 0)            # invariant over s -> loaded once per row tile

    def newbuf_map(j, s, slot):
        return (slot[0], j, 0)      # invariant over s -> written back once per tile

    def seq_map(j, s, slot):
        return (s, j, 0)

    return pl.pallas_call(
        _append_unroll_kernel,
        out_shape=(
            jax.ShapeDtypeStruct(buf.shape, buf.dtype),   # new_buf (aliased)
            jax.ShapeDtypeStruct(buf.shape, buf.dtype),   # ordered deque
        ),
        grid_spec=pltpu.PrefetchScalarGridSpec(
            num_scalar_prefetch=1,
            grid=(n_tiles, S),
            in_specs=[
                pl.BlockSpec((1, row_tile, LANE), buf_map),
                pl.BlockSpec((1, row_tile, LANE), x_map),
            ],
            out_specs=[
                pl.BlockSpec((1, row_tile, LANE), newbuf_map),
                pl.BlockSpec((1, row_tile, LANE), seq_map),
            ],
        ),
        # Call args are (slot, buf, x_row) -> buf (operand 1) aliases output 0, so the
        # untouched ring rows are preserved in place and the append stays O(F) writes.
        # (Donation validated end-to-end by the __main__ tests: rows written on prior
        #  steps survive later appends.)
        input_output_aliases={1: 0},
        compiler_params=pltpu.CompilerParams(
            # Row tiles are fully independent -> "parallel" (v7x megacore shards j
            # when n_tiles >= 2).  The slot-row output block is invariant over s, so
            # that axis must stay "arbitrary".  For tiny buffers (n_tiles == 1) use
            # the XLA fallback path instead of expecting both v7x cores to help.
            dimension_semantics=("parallel", "arbitrary"),
            vmem_limit_bytes=vmem_limit_bytes,
        ),
    )(slot, buf, x_row)


class RnnInputAdapter:
    """Functional JAX/Pallas port of the PyTorch RnnInputAdapter.

    PyTorch: self.seq_obs = deque(maxlen=S); forward(x) appends x and returns the
    deque.  Mutable nn.Module / deque identity has no Pallas equivalent, so state =
    (ring buffer (S, rows, 128), ptr, count) is threaded explicitly.  forward returns
    (new_state, (seq, count)) where seq is (S, *obs_shape) oldest -> newest; the valid
    deque entries are seq[S - count:] (leading rows are zeros until the deque fills,
    the caller masks with `count`).
    """

    def __init__(self, rnn_config, obs_shape, dtype=jnp.float32, min_pallas_bytes=0):
        self.seq_len = int(rnn_config["sequence_length"])
        self.obs_shape = tuple(int(d) for d in obs_shape)
        self.dtype = jnp.dtype(dtype)
        feat = 1
        for d in self.obs_shape:
            feat *= d
        self.feat = feat
        itemsize = self.dtype.itemsize
        # Sublane multiple is dtype dependent: 8 (f32) / 16 (bf16) / 32 (int8/fp8).
        self.sublane = max(8, 32 // itemsize)
        rows = pl.cdiv(feat, LANE)
        rows = ((rows + self.sublane - 1) // self.sublane) * self.sublane
        self.rows = rows
        self.padded_feat = rows * LANE
        cap_bytes, self.vmem_limit_bytes = _vmem_budget()
        self.row_tile = _pick_row_tile(rows, itemsize, self.sublane, cap_bytes)
        # Below `min_pallas_bytes` the fixed pallas_call launch cost dominates a
        # few-KiB copy; fall back to XLA dynamic_update_slice + take in that regime.
        buf_bytes = self.seq_len * self.padded_feat * itemsize
        self.use_pallas = buf_bytes >= int(min_pallas_bytes)

    def init_state(self):
        buf = jnp.zeros((self.seq_len, self.rows, LANE), dtype=self.dtype)
        ptr = jnp.zeros((), dtype=jnp.int32)     # next ring slot to write
        count = jnp.zeros((), dtype=jnp.int32)   # number of valid entries (<= S)
        return buf, ptr, count

    def _to_row(self, x):
        x_flat = x.astype(self.dtype).reshape(-1)
        if self.padded_feat != self.feat:
            # TODO(synk): absorb this pad (and the matching slice in forward) into the
            # kernel with a masked tail store; it only triggers for obs shapes whose
            # flat size is not a multiple of sublane*128.
            x_flat = jnp.pad(x_flat, (0, self.padded_feat - self.feat))
        return x_flat.reshape(1, self.rows, LANE)

    def forward(self, state, x):
        buf, ptr, count = state
        x_row = self._to_row(x)

        if self.use_pallas:
            slot = ptr.reshape(1).astype(jnp.int32)
            new_buf, ordered = fused_append_unroll(
                buf, x_row, slot,
                row_tile=self.row_tile,
                vmem_limit_bytes=self.vmem_limit_bytes)
        else:
            # Small-buffer path: XLA-fused append + gather (cheaper than two launches).
            new_buf = lax.dynamic_update_slice_in_dim(buf, x_row, ptr, axis=0)
            idx = lax.rem(ptr + 1 + jnp.arange(self.seq_len, dtype=jnp.int32),
                          self.seq_len)
            ordered = jnp.take(new_buf, idx, axis=0)

        new_ptr = lax.rem(ptr + 1, self.seq_len)
        new_count = jnp.minimum(count + 1, self.seq_len)

        seq = ordered.reshape(self.seq_len, self.padded_feat)
        if self.padded_feat != self.feat:
            seq = seq[:, : self.feat]
        seq = seq.reshape((self.seq_len,) + self.obs_shape)
        return (new_buf, new_ptr, new_count), (seq, new_count)


if __name__ == "__main__":
    root = jax.random.PRNGKey(0)

    def run_steps(adapter, xs):
        step = jax.jit(adapter.forward, donate_argnums=(0,))
        state = adapter.init_state()
        seq = count = None
        for x in xs:
            state, (seq, count) = step(state, x)
        return jax.block_until_ready(seq), int(count)

    def reference_deque(xs, seq_len, obs_shape):
        # Pure-JAX reference of the deque semantics on a zero-initialized buffer.
        buf = jnp.zeros((seq_len,) + obs_shape, dtype=jnp.float32)
        for x in xs:
            buf = jnp.concatenate([buf[1:], x[None]], axis=0)
        return buf

    # --- Test 1: lane-aligned NCHW obs, deque not yet full, Pallas path --------------
    obs_shape, seq_len, n_steps = (2, 4, 16, 16), 8, 3
    keys = jax.random.split(root, n_steps)
    xs = [jax.random.normal(k, obs_shape, dtype=jnp.float32) for k in keys]
    adapter = RnnInputAdapter({"sequence_length": seq_len}, obs_shape)
    assert adapter.use_pallas
    seq, count = run_steps(adapter, xs)
    ref = reference_deque(xs, seq_len, obs_shape)
    assert count == min(n_steps, seq_len)
    assert jnp.allclose(seq, ref), "Pallas ring deque != reference (aligned obs)"
    assert jnp.allclose(seq[-1], xs[-1]), "newest deque entry != last appended obs"

    # --- Test 2: ragged obs (pad/slice path) + ring wrap-around -----------------------
    obs_shape2, seq_len2, n_steps2 = (3, 5, 7), 4, 6
    keys2 = jax.random.split(jax.random.fold_in(root, 1), n_steps2)
    xs2 = [jax.random.normal(k, obs_shape2, dtype=jnp.float32) for k in keys2]
    adapter2 = RnnInputAdapter({"sequence_length": seq_len2}, obs_shape2)
    assert adapter2.use_pallas
    seq2, count2 = run_steps(adapter2, xs2)
    ref2 = reference_deque(xs2, seq_len2, obs_shape2)
    assert count2 == seq_len2
    assert jnp.allclose(seq2, ref2), "Pallas ring deque != reference (ragged obs)"

    # --- Test 3: small-buffer XLA fallback path matches the Pallas path ---------------
    adapter3 = RnnInputAdapter({"sequence_length": seq_len}, obs_shape,
                               min_pallas_bytes=1 << 30)
    assert not adapter3.use_pallas
    seq3, count3 = run_steps(adapter3, xs)
    assert count3 == count
    assert jnp.allclose(seq3, seq), "XLA fallback path != Pallas path"

    print("KERNEL_OK")
</pallas_src>

<mosaic_0001>
module attributes {stable_mosaic.version = 11 : i64} {
  func.func @_append_unroll_kernel(%arg0: i32, %arg1: i32, %arg2: memref<1xi32, #tpu.memory_space<smem>>, %arg3: memref<1x16x128xf32, #tpu.memory_space<vmem>>, %arg4: memref<1x16x128xf32, #tpu.memory_space<vmem>>, %arg5: memref<1x16x128xf32, #tpu.memory_space<vmem>>, %arg6: memref<1x16x128xf32, #tpu.memory_space<vmem>>) attributes {dimension_semantics = [#tpu.dimension_semantics<parallel>, #tpu.dimension_semantics<arbitrary>], iteration_bounds = array<i64: 1, 8>, scalar_prefetch = 1 : i64, scratch_operands = 0 : i64, tpu.core_type = #tpu.core_type<tc>, window_params = [{transform_indices = @transform_0, window_bounds = array<i64: 1, 16, 128>}, {transform_indices = @transform_1, window_bounds = array<i64: 1, 16, 128>}, {transform_indices = @transform_2, window_bounds = array<i64: 1, 16, 128>}, {transform_indices = @transform_3, window_bounds = array<i64: 1, 16, 128>}]} {
    %c7_i32 = arith.constant 7 : i32
    %0 = arith.cmpi eq, %arg1, %c7_i32 : i32
    %c0_i32 = arith.constant 0 : i32
    %1 = arith.cmpi eq, %arg1, %c0_i32 : i32
    %2 = arith.extui %1 : i1 to i32
    %c0_i32_0 = arith.constant 0 : i32
    %3 = arith.cmpi ne, %2, %c0_i32_0 : i32
    scf.if %3 {
      %c0 = arith.constant 0 : index
      %c0_3 = arith.constant 0 : index
      %c0_4 = arith.constant 0 : index
      %9 = vector.load %arg4[%c0, %c0_3, %c0_4] : memref<1x16x128xf32, #tpu.memory_space<vmem>>, vector<1x16x128xf32>
      %c0_5 = arith.constant 0 : index
      %c0_6 = arith.constant 0 : index
      %c0_7 = arith.constant 0 : index
      %10 = vector.load %arg5[%c0_5, %c0_6, %c0_7] : memref<1x16x128xf32, #tpu.memory_space<vmem>>, vector<1x16x128xf32>
      tpu.vector_store %arg5[%c0_5, %c0_6, %c0_7], %9 {strides = array<i32>} : memref<1x16x128xf32, #tpu.memory_space<vmem>>, vector<1x16x128xf32>,
    } else {
    }
    %4 = arith.extui %0 : i1 to i32
    %c0_i32_1 = arith.constant 0 : i32
    %5 = arith.cmpi ne, %4, %c0_i32_1 : i32
    scf.if %5 {
      %c0 = arith.constant 0 : index
      %c0_3 = arith.constant 0 : index
      %c0_4 = arith.constant 0 : index
      %9 = vector.load %arg4[%c0, %c0_3, %c0_4] : memref<1x16x128xf32, #tpu.memory_space<vmem>>, vector<1x16x128xf32>
      %c0_5 = arith.constant 0 : index
      %c0_6 = arith.constant 0 : index
      %c0_7 = arith.constant 0 : index
      %10 = vector.load %arg6[%c0_5, %c0_6, %c0_7] : memref<1x16x128xf32, #tpu.memory_space<vmem>>, vector<1x16x128xf32>
      tpu.vector_store %arg6[%c0_5, %c0_6, %c0_7], %9 {strides = array<i32>} : memref<1x16x128xf32, #tpu.memory_space<vmem>>, vector<1x16x128xf32>,
    } else {
    }
    %true = arith.constant true
    %6 = arith.xori %0, %true : i1
    %7 = arith.extui %6 : i1 to i32
    %c0_i32_2 = arith.constant 0 : i32
    %8 = arith.cmpi ne, %7, %c0_i32_2 : i32
    scf.if %8 {
      %c0 = arith.constant 0 : index
      %c0_3 = arith.constant 0 : index
      %c0_4 = arith.constant 0 : index
      %9 = vector.load %arg3[%c0, %c0_3, %c0_4] : memref<1x16x128xf32, #tpu.memory_space<vmem>>, vector<1x16x128xf32>
      %c0_5 = arith.constant 0 : index
      %c0_6 = arith.constant 0 : index
      %c0_7 = arith.constant 0 : index
      %10 = vector.load %arg6[%c0_5, %c0_6, %c0_7] : memref<1x16x128xf32, #tpu.memory_space<vmem>>, vector<1x16x128xf32>
      tpu.vector_store %arg6[%c0_5, %c0_6, %c0_7], %9 {strides = array<i32>} : memref<1x16x128xf32, #tpu.memory_space<vmem>>, vector<1x16x128xf32>,
    } else {
    }
    return
  }
  func.func @transform_0(%arg0: i32, %arg1: i32, %arg2: memref<1xi32, #tpu.memory_space<smem>>) -> (i32, i32, i32) {
    %c0 = arith.constant 0 : index
    %0 = memref.load %arg2[%c0] : memref<1xi32, #tpu.memory_space<smem>>
    %c1_i32 = arith.constant 1 : i32
    %1 = arith.addi %0, %c1_i32 : i32
    %c6_i32 = arith.constant 6 : i32
    %2 = arith.minsi %arg1, %c6_i32 : i32
    %3 = arith.addi %1, %2 : i32
    %c8_i32 = arith.constant 8 : i32
    %4 = arith.remsi %3, %c8_i32 : i32
    %c0_i32 = arith.constant 0 : i32
    %c0_i32_0 = arith.constant 0 : i32
    return %4, %arg0, %c0_i32 : i32, i32, i32
  }
  func.func @transform_1(%arg0: i32, %arg1: i32, %arg2: memref<1xi32, #tpu.memory_space<smem>>) -> (i32, i32, i32) {
    %c0_i32 = arith.constant 0 : i32
    %c0_i32_0 = arith.constant 0 : i32
    %c0_i32_1 = arith.constant 0 : i32
    return %c0_i32, %arg0, %c0_i32_0 : i32, i32, i32
  }
  func.func @transform_2(%arg0: i32, %arg1: i32, %arg2: memref<1xi32, #tpu.memory_space<smem>>) -> (i32, i32, i32) {
    %c0 = arith.constant 0 : index
    %0 = memref.load %arg2[%c0] : memref<1xi32, #tpu.memory_space<smem>>
    %c0_i32 = arith.constant 0 : i32
    %c0_i32_0 = arith.constant 0 : i32
    return %0, %arg0, %c0_i32 : i32, i32, i32
  }
  func.func @transform_3(%arg0: i32, %arg1: i32, %arg2: memref<1xi32, #tpu.memory_space<smem>>) -> (i32, i32, i32) {
    %c0_i32 = arith.constant 0 : i32
    %c0_i32_0 = arith.constant 0 : i32
    return %arg1, %arg0, %c0_i32 : i32, i32, i32
  }
}

</mosaic_0001>

<bundles_post_ra>
// kernel: forward.1
= control target key start
LH: loop header
LB: loop body
LE: loop exit
PB: predicated region body
PF: predicated region fallthrough
CT: control target
= control target key end

     0   :  { %s615_s17 = smov 0   ;;  %s617_s18 = smov 0   ;;  %s678_s0 = inlined_call_operand.<no memory space> [shape: s32[1], index: 0, kind: input, shape index: {}]   ;;  %s679_s1 = inlined_call_operand.vmem [shape: f32[8,16,128], index: 1, kind: input, shape index: {}, may-alias: {1,3}]   ;;  %s680_s2 = inlined_call_operand.vmem [shape: f32[1,16,128], index: 2, kind: input, shape index: {}]   ;;  %s681_s3 = inlined_call_operand.vmem [shape: f32[8,16,128], index: 3, kind: output, shape index: {0}, may-alias: {1,3}]   ;;  %s682_s4 = inlined_call_operand.vmem [shape: f32[8,16,128], index: 4, kind: output, shape index: {1}]  }
   0x1   :  { %10 = sst [smem:[#allocation3]] %s678_s0  ;;  %s619_s19 = smov 0  }
   0x2 LB: > { %s25_s0 = sadd.s32 1, %s581_s18  ;;  %p523_p0 = scmp.ge.s32.totalorder %s585_s19, 1  ;;  %s585_s19 = sphi %s619_s19, %s16_s19   ;;  %s581_s18 = sphi %s617_s18, %s684_s18   ;;  %s577_s17 = sphi %s615_s17, %s683_s17  }
   0x3   : > { %p26_p1 = scmp.ge.s32.totalorder %s25_s0, 8  ;;  %p222_p2 = scmp.lt.s32.totalorder %s585_s19, 9 }
   0x5   : > { %s686_s0 = smov (%p26_p1, %s25_s0), 0  ;;  %p223_p3 = pnand %p523_p0, %p222_p2 }
   0x6   : > { %s280_s20 = sld [smem:[#allocation3]] (!%p223_p3)  ;;  %p282_p4 = scmp.lt.s32.totalorder (!%p223_p3), %s577_s17, 6 }
   0x7   : > { %226 = sbr.rel (%p223_p3) target bundleno = 50 (0x32), region = 28  ;;  %p331_p5 = scmp.lt.s32.totalorder (!%p223_p3), %s577_s17, 7 }
   0x8   : > { %p531_p9 = scmp.ne.s32.totalorder (!%p223_p3), %s577_s17, 0 }
   0xc   : > { %s283_s21 = scalar_select %p282_p4, %s577_s17, 6 }
   0xd   : > { %s332_s22 = scalar_select %p331_p5, %s577_s17, 7 }
   0xe   : > { %s281_s24 = sadd.s32 1, %s280_s20  ;;  %p320_p7 = scmp.lt.s32.totalorder %s280_s20, 7 }
   0xf   : > { %s538_s23 = sshll.u32 %s332_s22, 4  ;;  %s284_s25 = sadd.s32 %s283_s21, %s281_s24 }
  0x10   : > { %s642_s28 = scalar_lea.vmem %s682_s4, %s538_s23  ;;  %p285_p6 = scmp.lt.s32.totalorder %s284_s25, 0 }
  0x11   : > { %s286_s29 = ssub.s32 0, %s284_s25  ;;  %s690_s20 = smov (!%p320_p7, %s280_s20), 7 }
  0x12   : > { %s524_s30 = smin.u32 %s286_s29, %s284_s25  ;;  %s537_s7 = sshll.u32 %s690_s20, 4 }
  0x13   : > { %s288_s5 = sand.u32 7, %s524_s30   ;;  %s327_s10 = scalar_lea.vmem %s681_s3, %s537_s7 }
  0x14   : > { %s289_s6 = ssub.s32 0, %s288_s5 }
  0x15   : > { %s688_s6 = smov (!%p285_p6, %s289_s6), %s288_s5 }
  0x16   : > { %p292_p8 = scmp.lt.s32.totalorder %s688_s6, 7  ;;  %344 = sbr.rel (%p531_p9) target bundleno = 30 (0x1e), region = 32 }
  0x18   : > { %s692_s6 = smov (!%p292_p8, %s688_s6), 7 }
  0x19   : > { %s536_s11 = sshll.u32 %s692_s6, 4 }
  0x1a   : > { %s299_s14 = scalar_lea.vmem %s679_s1, %s536_s11 }
  0x1b   : > { %v345_v0 = vld [vmem:[%s680_s2] sm:$0xff]  ;;  %v346_v1 = vld [vmem:[%s680_s2 + $0x8] sm:$0xff] }
  0x1c   : > { %347 = vst [vmem:[%s327_s10] sm:$0xff] %v345_v0 }
  0x1d   : > { %348 = vst [vmem:[%s327_s10 + $0x8] sm:$0xff] %v346_v1 }
  0x1e PF: > { %p532_p10 = scmp.ne.s32.totalorder %s577_s17, 7 }
  0x20   : > { %351 = sbr.rel (%p532_p10) target bundleno = 40 (0x28), region = 36 }
  0x25   : > { %v352_v2 = vld [vmem:[%s680_s2] sm:$0xff]  ;;  %v353_v3 = vld [vmem:[%s680_s2 + $0x8] sm:$0xff] }
  0x26   : > { %354 = vst [vmem:[%s642_s28] sm:$0xff] %v352_v2 }
  0x27   : > { %355 = vst [vmem:[%s642_s28 + $0x8] sm:$0xff] %v353_v3 }
  0x28 PF: > { %p533_p11 = scmp.eq.s32.totalorder %s577_s17, 7 }
  0x2a   : > { %359 = sbr.rel (%p533_p11) target bundleno = 50 (0x32), region = 40 }
  0x2f   : > { %v360_v4 = vld [vmem:[%s299_s14] sm:$0xff]  ;;  %v361_v5 = vld [vmem:[%s299_s14 + $0x8] sm:$0xff] }
  0x30   : > { %362 = vst [vmem:[%s642_s28] sm:$0xff] %v360_v4 }
  0x31   : > { %363 = vst [vmem:[%s642_s28 + $0x8] sm:$0xff] %v361_v5 }
  0x32 PF: > { %s16_s19 = sadd.s32 1, %s585_s19   ;;  %s683_s17 = smov %s581_s18 }
  0x33   : > { %p13_p12 = scmp.ge.s32.totalorder %s16_s19, 10   ;;  %s684_s18 = smov %s686_s0 }
  0x35   :  { %15 = sbr.rel (!%p13_p12) target bundleno = 2 (0x2), region = 85 }

</bundles_post_ra>
